<compile_context>
chip_gen: v7x
topology: tpu7x:2x2x1
jax: 0.10.0
libtpu: 0.0.40
codegen_flags: <defaults>
</compile_context>

<pallas_src>
import numpy as np
import jax
import jax.numpy as jnp
from jax import lax
from jax.experimental import pallas as pl
from jax.experimental.pallas import tpu as pltpu

HEAD_ROWS = 8  # 2-class logit head padded to one full sublane group (8 rows)


# ---------------------------------------------------------------------------
# Kernel bodies
# ---------------------------------------------------------------------------
def _linear_relu(x_bf16, w_ref, b_ref):
    """bf16 x bf16 MXU matmul, f32 accumulation, f32 bias, ReLU, back to bf16."""
    y = jnp.dot(x_bf16, w_ref[...], preferred_element_type=jnp.float32) + b_ref[...]
    return jnp.maximum(y, 0.0).astype(jnp.bfloat16)


def _fusion_and_head(h2, text_contrib, w3b_ref, b3_ref, w4_ref, b4_ref,
                     w5_ref, b5_ref, w6t_ref, b6_ref, out_ref):
    # fusion_layer: Linear(concat([text, h2])) -> ReLU -> Linear -> ReLU
    # concat-then-matmul rewritten as a split-weight sum (identical math):
    #   concat([t, h]) @ W3 == t @ W3[:T] + h @ W3[T:]
    f_pre = (jnp.dot(h2, w3b_ref[...], preferred_element_type=jnp.float32)
             + b3_ref[...])
    if text_contrib is not None:
        f_pre = f_pre + text_contrib
    f1 = jnp.maximum(f_pre, 0.0).astype(jnp.bfloat16)
    f2 = _linear_relu(f1, w4_ref, b4_ref)
    # classifier: Linear(half->64) -> ReLU -> Linear(64->2)
    c1 = _linear_relu(f2, w5_ref, b5_ref)
    # Transposed head: out[o, b] = sum_k w6t[o, k] * c1[b, k] + b6[o].
    # (8, batch_tile) f32 output slab -> ~16x fewer output HBM bytes than a
    # (batch, 128) f32 slab. dot_general contracts the last dims of both
    # operands (the MXU's "B transposed" path), no materialized transpose.
    out_ref[...] = (lax.dot_general(w6t_ref[...], c1,
                                    (((1,), (1,)), ((), ())),
                                    preferred_element_type=jnp.float32)
                    + b6_ref[...])


def predictor_kernel_zero_text(num_ref,
                               w1_ref, b1_ref, w2_ref, b2_ref,
                               w3b_ref, b3_ref, w4_ref, b4_ref,
                               w5_ref, b5_ref, w6t_ref, b6_ref,
                               out_ref):
    """forward() path with input_ids=None: text features are exactly zero, so
    the text DMA and the text @ W3a matmul are dropped (same math)."""
    x = num_ref[...].astype(jnp.bfloat16)          # in-kernel cast (free VPU)
    h1 = _linear_relu(x, w1_ref, b1_ref)
    h2 = _linear_relu(h1, w2_ref, b2_ref)
    _fusion_and_head(h2, None, w3b_ref, b3_ref, w4_ref, b4_ref,
                     w5_ref, b5_ref, w6t_ref, b6_ref, out_ref)


def predictor_kernel_with_text(text_ref, num_ref,
                               w1_ref, b1_ref, w2_ref, b2_ref,
                               w3a_ref, w3b_ref, b3_ref, w4_ref, b4_ref,
                               w5_ref, b5_ref, w6t_ref, b6_ref,
                               out_ref):
    """forward() path with precomputed pooled text features."""
    x = num_ref[...].astype(jnp.bfloat16)
    t = text_ref[...].astype(jnp.bfloat16)
    h1 = _linear_relu(x, w1_ref, b1_ref)
    h2 = _linear_relu(h1, w2_ref, b2_ref)
    text_contrib = jnp.dot(t, w3a_ref[...], preferred_element_type=jnp.float32)
    _fusion_and_head(h2, text_contrib, w3b_ref, b3_ref, w4_ref, b4_ref,
                     w5_ref, b5_ref, w6t_ref, b6_ref, out_ref)


# ---------------------------------------------------------------------------
# Batch-tiling plan (generation-aware) + wrapper
# ---------------------------------------------------------------------------
def _round_up(x, m):
    return ((x + m - 1) // m) * m


def _num_tensorcores():
    """Best-effort TensorCore count: v7x has 2 TCs/chip, v5e/v6e have 1."""
    try:
        kind = (getattr(jax.devices()[0], "device_kind", "") or "").lower()
        if "v7" in kind or "7x" in kind:
            return 2
    except Exception:
        pass
    return 1


def _plan_batch(batch, num_tc):
    """Pick (batch_tile, padded_batch).

    Single-TC chips: one maximal tile (grid-step overhead dominates here;
    per-tile VMEM is a few hundred KiB, nowhere near the scoped limit).
    2-TC chips with a big batch: exactly two 128-aligned "parallel" tiles.
    Awkward batch sizes are zero-padded up to the tile instead of falling
    back to tiny tiles and hundreds of ~0.35 us grid steps.
    """
    if num_tc >= 2 and batch >= 256:
        tile = _round_up(pl.cdiv(batch, num_tc), 128)
    else:
        tile = _round_up(batch, 8)
    return tile, _round_up(batch, tile)


def hybrid_bug_predictor(numerical_features, params, text_features=None, *,
                         batch_tile=None, num_tensorcores=None):
    B, n_dim = numerical_features.shape
    if num_tensorcores is None:
        num_tensorcores = _num_tensorcores()
    if batch_tile is None:
        batch_tile, padded_B = _plan_batch(B, num_tensorcores)
    else:
        padded_B = _round_up(B, batch_tile)
    grid = (padded_B // batch_tile,)
    if grid[0] > 1:
        # multi-step grid: lane-dense output blocks & sublane-aligned inputs
        assert batch_tile % 128 == 0, batch_tile

    def pad_batch(arr):
        if arr.shape[0] == padded_B:
            return arr
        return jnp.pad(arr, ((0, padded_B - arr.shape[0]), (0, 0)))

    # NOTE: no wrapper-side bf16 cast — inputs go to the kernel as-is (f32)
    # and are cast right after the ref load inside the kernel body.
    num_in = pad_batch(numerical_features)

    def batched(feat_dim):
        return pl.BlockSpec((batch_tile, feat_dim), lambda i: (i, 0))

    def rep(arr):  # weights/biases: same (whole-array) block every grid step
        nd = arr.ndim
        return pl.BlockSpec(arr.shape, lambda i, _n=nd: (0,) * _n)

    H = params["w1"].shape[1]          # hidden_dim
    half = params["w2"].shape[1]       # hidden_dim // 2
    T = params["w3a"].shape[0]         # transformer_dim

    if text_features is None:
        kernel = predictor_kernel_zero_text
        weight_names = ("w1", "b1", "w2", "b2", "w3b", "b3",
                        "w4", "b4", "w5", "b5", "w6t", "b6")
        operands = [num_in] + [params[k] for k in weight_names]
        in_specs = [batched(n_dim)] + [rep(params[k]) for k in weight_names]
        flops_row = 2 * (n_dim * H + H * half + half * H + H * half
                         + half * 64 + 64 * HEAD_ROWS)
        act_bytes = (padded_B * n_dim * num_in.dtype.itemsize
                     + padded_B * HEAD_ROWS * 4)
    else:
        kernel = predictor_kernel_with_text
        text_in = pad_batch(text_features)
        weight_names = ("w1", "b1", "w2", "b2", "w3a", "w3b", "b3",
                        "w4", "b4", "w5", "b5", "w6t", "b6")
        operands = [text_in, num_in] + [params[k] for k in weight_names]
        in_specs = ([batched(T), batched(n_dim)]
                    + [rep(params[k]) for k in weight_names])
        flops_row = 2 * (n_dim * H + H * half + T * H + half * H + H * half
                         + half * 64 + 64 * HEAD_ROWS)
        act_bytes = (padded_B * (T * text_in.dtype.itemsize
                                 + n_dim * num_in.dtype.itemsize)
                     + padded_B * HEAD_ROWS * 4)

    weight_bytes = sum(int(np.prod(params[k].shape)) * params[k].dtype.itemsize
                       for k in weight_names)
    cost = pl.CostEstimate(flops=padded_B * flops_row, transcendentals=0,
                           bytes_accessed=act_bytes + weight_bytes)

    # Transposed output: (HEAD_ROWS, padded_B); each grid step owns one
    # (HEAD_ROWS, batch_tile) lane-dense block.
    out_spec = pl.BlockSpec((HEAD_ROWS, batch_tile), lambda i: (0, i))

    out_t = pl.pallas_call(
        kernel,
        out_shape=jax.ShapeDtypeStruct((HEAD_ROWS, padded_B), jnp.float32),
        grid=grid,
        in_specs=in_specs,
        out_specs=out_spec,
        compiler_params=pltpu.CompilerParams(
            dimension_semantics=("parallel",)),
        cost_estimate=cost,
    )(*operands)

    # Tiny (8, padded_B) slab -> slicing/transposing it in XLA is negligible.
    return out_t[:2, :B].T


# ---------------------------------------------------------------------------
# Deterministic parameter construction (Xavier-uniform weights, zero biases).
# Weights stored [in, out] in bf16; biases f32. The 2-class head is stored
# TRANSPOSED and padded to 8 sublane rows: w6t[o, k] multiplies c1[b, k].
# ---------------------------------------------------------------------------
def make_params(key, num_dim, transformer_dim, hidden_dim):
    half = hidden_dim // 2
    fusion_dim = transformer_dim + half
    ks = jax.random.split(key, 6)

    def xavier(k, fan_in, fan_out):
        a = float(np.sqrt(6.0 / (fan_in + fan_out)))
        return jax.random.uniform(k, (fan_in, fan_out), jnp.float32, -a, a)

    w1 = xavier(ks[0], num_dim, hidden_dim)
    w2 = xavier(ks[1], hidden_dim, half)
    w3 = xavier(ks[2], fusion_dim, hidden_dim)
    w4 = xavier(ks[3], hidden_dim, half)
    w5 = xavier(ks[4], half, 64)
    w6 = xavier(ks[5], 64, 2)

    # Transposed, sublane-padded head: rows 0..1 are the real classes.
    w6t = jnp.zeros((HEAD_ROWS, 64), jnp.float32).at[:2, :].set(w6.T)

    bf16 = jnp.bfloat16
    return dict(
        w1=w1.astype(bf16), b1=jnp.zeros((1, hidden_dim), jnp.float32),
        w2=w2.astype(bf16), b2=jnp.zeros((1, half), jnp.float32),
        w3a=w3[:transformer_dim].astype(bf16),   # multiplies text features
        w3b=w3[transformer_dim:].astype(bf16),   # multiplies numerical encoding
        b3=jnp.zeros((1, hidden_dim), jnp.float32),
        w4=w4.astype(bf16), b4=jnp.zeros((1, half), jnp.float32),
        w5=w5.astype(bf16), b5=jnp.zeros((1, 64), jnp.float32),
        w6t=w6t.astype(bf16), b6=jnp.zeros((HEAD_ROWS, 1), jnp.float32),
    )


# ---------------------------------------------------------------------------
# Pure-JAX reference with the identical bf16/f32 dtype flow.
# ---------------------------------------------------------------------------
def reference_forward(numerical_features, params, text_features=None):
    bf16, f32 = jnp.bfloat16, jnp.float32
    p = params
    relu = lambda v: jnp.maximum(v, 0.0)

    x = numerical_features.astype(bf16)
    h = relu(jnp.dot(x, p["w1"], preferred_element_type=f32) + p["b1"]).astype(bf16)
    h = relu(jnp.dot(h, p["w2"], preferred_element_type=f32) + p["b2"]).astype(bf16)

    f_pre = jnp.dot(h, p["w3b"], preferred_element_type=f32) + p["b3"]
    if text_features is not None:
        f_pre = f_pre + jnp.dot(text_features.astype(bf16), p["w3a"],
                                preferred_element_type=f32)
    f = relu(f_pre).astype(bf16)
    f = relu(jnp.dot(f, p["w4"], preferred_element_type=f32) + p["b4"]).astype(bf16)

    c = relu(jnp.dot(f, p["w5"], preferred_element_type=f32) + p["b5"]).astype(bf16)
    logits = (jnp.dot(c, p["w6t"][:2].T, preferred_element_type=f32)
              + p["b6"][:2, 0])
    return logits


if __name__ == "__main__":
    # Small shapes consistent with the module: batch intentionally not a
    # multiple of 8 to exercise the pad-and-slice path; feature dims small.
    batch = 5
    num_dim = 16            # numerical_features_dim
    hidden_dim = 32         # hidden_dim (half = 16)
    transformer_dim = 64    # small stand-in for the CodeBERT hidden size

    key = jax.random.PRNGKey(0)
    k_params, k_num, k_text = jax.random.split(key, 3)

    params = make_params(k_params, num_dim, transformer_dim, hidden_dim)
    numerical_features = jax.random.normal(k_num, (batch, num_dim), jnp.float32)

    # Path 1: forward() with input_ids=None -> zero text features
    # (specialized kernel: no text DMA, no text matmul).
    logits = hybrid_bug_predictor(numerical_features, params)
    jax.block_until_ready(logits)
    ref = reference_forward(numerical_features, params)
    np.testing.assert_allclose(np.asarray(logits), np.asarray(ref),
                               rtol=1e-2, atol=1e-2)
    assert logits.shape == (batch, 2)

    # Path 2: forward() with precomputed pooled text features
    # (stand-in for the CodeBERT pooler_output).
    text_features = jax.random.normal(k_text, (batch, transformer_dim),
                                      jnp.float32)
    logits_t = hybrid_bug_predictor(numerical_features, params,
                                    text_features=text_features)
    jax.block_until_ready(logits_t)
    ref_t = reference_forward(numerical_features, params,
                              text_features=text_features)
    np.testing.assert_allclose(np.asarray(logits_t), np.asarray(ref_t),
                               rtol=1e-2, atol=1e-2)
    assert logits_t.shape == (batch, 2)

    print("KERNEL_OK")
</pallas_src>

<mosaic_0001>
module attributes {stable_mosaic.version = 11 : i64} {
  func.func @predictor_kernel_zero_text(%arg0: i32, %arg1: memref<8x16xf32, #tpu.memory_space<vmem>>, %arg2: memref<16x32xbf16, #tpu.memory_space<vmem>>, %arg3: memref<1x32xf32, #tpu.memory_space<vmem>>, %arg4: memref<32x16xbf16, #tpu.memory_space<vmem>>, %arg5: memref<1x16xf32, #tpu.memory_space<vmem>>, %arg6: memref<16x32xbf16, #tpu.memory_space<vmem>>, %arg7: memref<1x32xf32, #tpu.memory_space<vmem>>, %arg8: memref<32x16xbf16, #tpu.memory_space<vmem>>, %arg9: memref<1x16xf32, #tpu.memory_space<vmem>>, %arg10: memref<16x64xbf16, #tpu.memory_space<vmem>>, %arg11: memref<1x64xf32, #tpu.memory_space<vmem>>, %arg12: memref<8x64xbf16, #tpu.memory_space<vmem>>, %arg13: memref<8x1xf32, #tpu.memory_space<vmem>>, %arg14: memref<8x8xf32, #tpu.memory_space<vmem>>) attributes {dimension_semantics = [#tpu.dimension_semantics<parallel>], iteration_bounds = array<i64: 1>, scalar_prefetch = 0 : i64, scratch_operands = 0 : i64, tpu.core_type = #tpu.core_type<tc>, window_params = [{transform_indices = @transform_0, window_bounds = array<i64: 8, 16>}, {pipeline_mode = #tpu.pipeline_mode<synchronous>, transform_indices = @transform_1, window_bounds = array<i64: 16, 32>}, {pipeline_mode = #tpu.pipeline_mode<synchronous>, transform_indices = @transform_2, window_bounds = array<i64: 1, 32>}, {pipeline_mode = #tpu.pipeline_mode<synchronous>, transform_indices = @transform_3, window_bounds = array<i64: 32, 16>}, {pipeline_mode = #tpu.pipeline_mode<synchronous>, transform_indices = @transform_4, window_bounds = array<i64: 1, 16>}, {pipeline_mode = #tpu.pipeline_mode<synchronous>, transform_indices = @transform_5, window_bounds = array<i64: 16, 32>}, {pipeline_mode = #tpu.pipeline_mode<synchronous>, transform_indices = @transform_6, window_bounds = array<i64: 1, 32>}, {pipeline_mode = #tpu.pipeline_mode<synchronous>, transform_indices = @transform_7, window_bounds = array<i64: 32, 16>}, {pipeline_mode = #tpu.pipeline_mode<synchronous>, transform_indices = @transform_8, window_bounds = array<i64: 1, 16>}, {pipeline_mode = #tpu.pipeline_mode<synchronous>, transform_indices = @transform_9, window_bounds = array<i64: 16, 64>}, {pipeline_mode = #tpu.pipeline_mode<synchronous>, transform_indices = @transform_10, window_bounds = array<i64: 1, 64>}, {pipeline_mode = #tpu.pipeline_mode<synchronous>, transform_indices = @transform_11, window_bounds = array<i64: 8, 64>}, {pipeline_mode = #tpu.pipeline_mode<synchronous>, transform_indices = @transform_12, window_bounds = array<i64: 8, 1>}, {transform_indices = @transform_13, window_bounds = array<i64: 8, 8>}]} {
    %c0 = arith.constant 0 : index
    %c0_0 = arith.constant 0 : index
    %0 = vector.load %arg1[%c0, %c0_0] : memref<8x16xf32, #tpu.memory_space<vmem>>, vector<8x16xf32>
    %1 = arith.truncf %0 : vector<8x16xf32> to vector<8x16xbf16>
    %c0_1 = arith.constant 0 : index
    %c0_2 = arith.constant 0 : index
    %2 = vector.load %arg2[%c0_1, %c0_2] : memref<16x32xbf16, #tpu.memory_space<vmem>>, vector<16x32xbf16>
    %cst = arith.constant dense<0.000000e+00> : vector<8x32xf32>
    %3 = tpu.matmul %1, %2, %cst {dimension_numbers = #tpu.dot_dimension_numbers<[1], [0], [0], [1], [0, 0, 1, 1], [], []>} : vector<8x16xbf16>, vector<16x32xbf16>, vector<8x32xf32> -> vector<8x32xf32>
    %c0_3 = arith.constant 0 : index
    %c0_4 = arith.constant 0 : index
    %4 = vector.load %arg3[%c0_3, %c0_4] : memref<1x32xf32, #tpu.memory_space<vmem>>, vector<1x32xf32>
    %5 = vector.broadcast %4 : vector<1x32xf32> to vector<8x32xf32>
    %6 = arith.addf %3, %5 : vector<8x32xf32>
    %cst_5 = arith.constant 0.000000e+00 : f32
    %7 = vector.broadcast %cst_5 : f32 to vector<8x32xf32>
    %8 = arith.maximumf %6, %7 : vector<8x32xf32>
    %9 = arith.truncf %8 : vector<8x32xf32> to vector<8x32xbf16>
    %c0_6 = arith.constant 0 : index
    %c0_7 = arith.constant 0 : index
    %10 = vector.load %arg4[%c0_6, %c0_7] : memref<32x16xbf16, #tpu.memory_space<vmem>>, vector<32x16xbf16>
    %cst_8 = arith.constant dense<0.000000e+00> : vector<8x16xf32>
    %11 = tpu.matmul %9, %10, %cst_8 {dimension_numbers = #tpu.dot_dimension_numbers<[1], [0], [0], [1], [0, 0, 1, 1], [], []>} : vector<8x32xbf16>, vector<32x16xbf16>, vector<8x16xf32> -> vector<8x16xf32>
    %c0_9 = arith.constant 0 : index
    %c0_10 = arith.constant 0 : index
    %12 = vector.load %arg5[%c0_9, %c0_10] : memref<1x16xf32, #tpu.memory_space<vmem>>, vector<1x16xf32>
    %13 = vector.broadcast %12 : vector<1x16xf32> to vector<8x16xf32>
    %14 = arith.addf %11, %13 : vector<8x16xf32>
    %cst_11 = arith.constant 0.000000e+00 : f32
    %15 = vector.broadcast %cst_11 : f32 to vector<8x16xf32>
    %16 = arith.maximumf %14, %15 : vector<8x16xf32>
    %17 = arith.truncf %16 : vector<8x16xf32> to vector<8x16xbf16>
    %c0_12 = arith.constant 0 : index
    %c0_13 = arith.constant 0 : index
    %18 = vector.load %arg6[%c0_12, %c0_13] : memref<16x32xbf16, #tpu.memory_space<vmem>>, vector<16x32xbf16>
    %cst_14 = arith.constant dense<0.000000e+00> : vector<8x32xf32>
    %19 = tpu.matmul %17, %18, %cst_14 {dimension_numbers = #tpu.dot_dimension_numbers<[1], [0], [0], [1], [0, 0, 1, 1], [], []>} : vector<8x16xbf16>, vector<16x32xbf16>, vector<8x32xf32> -> vector<8x32xf32>
    %c0_15 = arith.constant 0 : index
    %c0_16 = arith.constant 0 : index
    %20 = vector.load %arg7[%c0_15, %c0_16] : memref<1x32xf32, #tpu.memory_space<vmem>>, vector<1x32xf32>
    %21 = vector.broadcast %20 : vector<1x32xf32> to vector<8x32xf32>
    %22 = arith.addf %19, %21 : vector<8x32xf32>
    %cst_17 = arith.constant 0.000000e+00 : f32
    %23 = vector.broadcast %cst_17 : f32 to vector<8x32xf32>
    %24 = arith.maximumf %22, %23 : vector<8x32xf32>
    %25 = arith.truncf %24 : vector<8x32xf32> to vector<8x32xbf16>
    %c0_18 = arith.constant 0 : index
    %c0_19 = arith.constant 0 : index
    %26 = vector.load %arg8[%c0_18, %c0_19] : memref<32x16xbf16, #tpu.memory_space<vmem>>, vector<32x16xbf16>
    %cst_20 = arith.constant dense<0.000000e+00> : vector<8x16xf32>
    %27 = tpu.matmul %25, %26, %cst_20 {dimension_numbers = #tpu.dot_dimension_numbers<[1], [0], [0], [1], [0, 0, 1, 1], [], []>} : vector<8x32xbf16>, vector<32x16xbf16>, vector<8x16xf32> -> vector<8x16xf32>
    %c0_21 = arith.constant 0 : index
    %c0_22 = arith.constant 0 : index
    %28 = vector.load %arg9[%c0_21, %c0_22] : memref<1x16xf32, #tpu.memory_space<vmem>>, vector<1x16xf32>
    %29 = vector.broadcast %28 : vector<1x16xf32> to vector<8x16xf32>
    %30 = arith.addf %27, %29 : vector<8x16xf32>
    %cst_23 = arith.constant 0.000000e+00 : f32
    %31 = vector.broadcast %cst_23 : f32 to vector<8x16xf32>
    %32 = arith.maximumf %30, %31 : vector<8x16xf32>
    %33 = arith.truncf %32 : vector<8x16xf32> to vector<8x16xbf16>
    %c0_24 = arith.constant 0 : index
    %c0_25 = arith.constant 0 : index
    %34 = vector.load %arg10[%c0_24, %c0_25] : memref<16x64xbf16, #tpu.memory_space<vmem>>, vector<16x64xbf16>
    %cst_26 = arith.constant dense<0.000000e+00> : vector<8x64xf32>
    %35 = tpu.matmul %33, %34, %cst_26 {dimension_numbers = #tpu.dot_dimension_numbers<[1], [0], [0], [1], [0, 0, 1, 1], [], []>} : vector<8x16xbf16>, vector<16x64xbf16>, vector<8x64xf32> -> vector<8x64xf32>
    %c0_27 = arith.constant 0 : index
    %c0_28 = arith.constant 0 : index
    %36 = vector.load %arg11[%c0_27, %c0_28] : memref<1x64xf32, #tpu.memory_space<vmem>>, vector<1x64xf32>
    %37 = vector.broadcast %36 : vector<1x64xf32> to vector<8x64xf32>
    %38 = arith.addf %35, %37 : vector<8x64xf32>
    %cst_29 = arith.constant 0.000000e+00 : f32
    %39 = vector.broadcast %cst_29 : f32 to vector<8x64xf32>
    %40 = arith.maximumf %38, %39 : vector<8x64xf32>
    %41 = arith.truncf %40 : vector<8x64xf32> to vector<8x64xbf16>
    %c0_30 = arith.constant 0 : index
    %c0_31 = arith.constant 0 : index
    %42 = vector.load %arg12[%c0_30, %c0_31] : memref<8x64xbf16, #tpu.memory_space<vmem>>, vector<8x64xbf16>
    %cst_32 = arith.constant dense<0.000000e+00> : vector<8x8xf32>
    %43 = tpu.matmul %42, %41, %cst_32 {dimension_numbers = #tpu.dot_dimension_numbers<[1], [1], [0], [0], [0, 0, 1, 0], [], []>} : vector<8x64xbf16>, vector<8x64xbf16>, vector<8x8xf32> -> vector<8x8xf32>
    %c0_33 = arith.constant 0 : index
    %c0_34 = arith.constant 0 : index
    %44 = vector.load %arg13[%c0_33, %c0_34] : memref<8x1xf32, #tpu.memory_space<vmem>>, vector<8x1xf32>
    %45 = vector.broadcast %44 : vector<8x1xf32> to vector<8x8xf32>
    %46 = arith.addf %43, %45 : vector<8x8xf32>
    %c0_35 = arith.constant 0 : index
    %c0_36 = arith.constant 0 : index
    %47 = vector.load %arg14[%c0_35, %c0_36] : memref<8x8xf32, #tpu.memory_space<vmem>>, vector<8x8xf32>
    tpu.vector_store %arg14[%c0_35, %c0_36], %46 {strides = array<i32>} : memref<8x8xf32, #tpu.memory_space<vmem>>, vector<8x8xf32>,
    return
  }
  func.func @transform_0(%arg0: i32) -> (i32, i32) {
    %c0_i32 = arith.constant 0 : i32
    %c0_i32_0 = arith.constant 0 : i32
    return %arg0, %c0_i32 : i32, i32
  }
  func.func @transform_1(%arg0: i32) -> (i32, i32) {
    %c0_i32 = arith.constant 0 : i32
    %c0_i32_0 = arith.constant 0 : i32
    %c0_i32_1 = arith.constant 0 : i32
    return %c0_i32, %c0_i32_0 : i32, i32
  }
  func.func @transform_2(%arg0: i32) -> (i32, i32) {
    %c0_i32 = arith.constant 0 : i32
    %c0_i32_0 = arith.constant 0 : i32
    %c0_i32_1 = arith.constant 0 : i32
    return %c0_i32, %c0_i32_0 : i32, i32
  }
  func.func @transform_3(%arg0: i32) -> (i32, i32) {
    %c0_i32 = arith.constant 0 : i32
    %c0_i32_0 = arith.constant 0 : i32
    %c0_i32_1 = arith.constant 0 : i32
    return %c0_i32, %c0_i32_0 : i32, i32
  }
  func.func @transform_4(%arg0: i32) -> (i32, i32) {
    %c0_i32 = arith.constant 0 : i32
    %c0_i32_0 = arith.constant 0 : i32
    %c0_i32_1 = arith.constant 0 : i32
    return %c0_i32, %c0_i32_0 : i32, i32
  }
  func.func @transform_5(%arg0: i32) -> (i32, i32) {
    %c0_i32 = arith.constant 0 : i32
    %c0_i32_0 = arith.constant 0 : i32
    %c0_i32_1 = arith.constant 0 : i32
    return %c0_i32, %c0_i32_0 : i32, i32
  }
  func.func @transform_6(%arg0: i32) -> (i32, i32) {
    %c0_i32 = arith.constant 0 : i32
    %c0_i32_0 = arith.constant 0 : i32
    %c0_i32_1 = arith.constant 0 : i32
    return %c0_i32, %c0_i32_0 : i32, i32
  }
  func.func @transform_7(%arg0: i32) -> (i32, i32) {
    %c0_i32 = arith.constant 0 : i32
    %c0_i32_0 = arith.constant 0 : i32
    %c0_i32_1 = arith.constant 0 : i32
    return %c0_i32, %c0_i32_0 : i32, i32
  }
  func.func @transform_8(%arg0: i32) -> (i32, i32) {
    %c0_i32 = arith.constant 0 : i32
    %c0_i32_0 = arith.constant 0 : i32
    %c0_i32_1 = arith.constant 0 : i32
    return %c0_i32, %c0_i32_0 : i32, i32
  }
  func.func @transform_9(%arg0: i32) -> (i32, i32) {
    %c0_i32 = arith.constant 0 : i32
    %c0_i32_0 = arith.constant 0 : i32
    %c0_i32_1 = arith.constant 0 : i32
    return %c0_i32, %c0_i32_0 : i32, i32
  }
  func.func @transform_10(%arg0: i32) -> (i32, i32) {
    %c0_i32 = arith.constant 0 : i32
    %c0_i32_0 = arith.constant 0 : i32
    %c0_i32_1 = arith.constant 0 : i32
    return %c0_i32, %c0_i32_0 : i32, i32
  }
  func.func @transform_11(%arg0: i32) -> (i32, i32) {
    %c0_i32 = arith.constant 0 : i32
    %c0_i32_0 = arith.constant 0 : i32
    %c0_i32_1 = arith.constant 0 : i32
    return %c0_i32, %c0_i32_0 : i32, i32
  }
  func.func @transform_12(%arg0: i32) -> (i32, i32) {
    %c0_i32 = arith.constant 0 : i32
    %c0_i32_0 = arith.constant 0 : i32
    %c0_i32_1 = arith.constant 0 : i32
    return %c0_i32, %c0_i32_0 : i32, i32
  }
  func.func @transform_13(%arg0: i32) -> (i32, i32) {
    %c0_i32 = arith.constant 0 : i32
    %c0_i32_0 = arith.constant 0 : i32
    return %c0_i32, %arg0 : i32, i32
  }
}

</mosaic_0001>

<bundles_post_ra>
// kernel: tpu_custom_call.1
= control target key start
LH: loop header
LB: loop body
LE: loop exit
PB: predicated region body
PF: predicated region fallthrough
CT: control target
= control target key end

     0   :  { %v544_v1 = vmov 0.0   ;;  %vm63_vm0 = vcmask 130048   ;;  %vm545_vm1 = vmmov 0   ;;  %s686_s0 = inlined_call_operand.vmem [shape: f32[8,16], index: 0, kind: input, shape index: {}]   ;;  %s687_s1 = inlined_call_operand.vmem [shape: bf16[16,32], index: 1, kind: input, shape index: {}]   ;;  %s688_s2 = inlined_call_operand.vmem [shape: f32[1,32], index: 2, kind: input, shape index: {}]   ;;  %s689_s3 = inlined_call_operand.vmem [shape: bf16[32,16], index: 3, kind: input, shape index: {}]   ;;  %s690_s4 = inlined_call_operand.vmem [shape: f32[1,16], index: 4, kind: input, shape index: {}]   ;;  %s691_s5 = inlined_call_operand.vmem [shape: bf16[16,32], index: 5, kind: input, shape index: {}]   ;;  %s692_s6 = inlined_call_operand.vmem [shape: f32[1,32], index: 6, kind: input, shape index: {}]   ;;  %s693_s7 = inlined_call_operand.vmem [shape: bf16[32,16], index: 7, kind: input, shape index: {}]   ;;  %s694_s8 = inlined_call_operand.vmem [shape: f32[1,16], index: 8, kind: input, shape index: {}]   ;;  %s695_s9 = inlined_call_operand.vmem [shape: bf16[16,64], index: 9, kind: input, shape index: {}]   ;;  %s696_s10 = inlined_call_operand.vmem [shape: f32[1,64], index: 10, kind: input, shape index: {}]   ;;  %s697_s11 = inlined_call_operand.vmem [shape: bf16[8,64], index: 11, kind: input, shape index: {}]   ;;  %s698_s12 = inlined_call_operand.vmem [shape: f32[8,1], index: 12, kind: input, shape index: {}]   ;;  %s699_s13 = inlined_call_operand.hbm [shape: f32[8,8], index: 13, kind: output, shape index: {}]  }
   0x1   :  { %v513_v0 = vld [vmem:[%s687_s1] sm:$0xff]   ;;  %468 = vmatprep.subr.bf16.mxu0 %v544_v1  ;;  %474 = vmatprep.subr.bf16.mxu1 %v544_v1 }
   0x2   :  { %v46_v2 = vld [vmem:[%s686_s0] sm:$0xff]  ;;  %469 = vmatpush3.bf16.msra.mxu0 %v513_v0  ;;  %470 = vmatprep.mubr.msk.bf16.mxu0 %vm545_vm1, %v544_v1 }
   0x3   :  { %v47_v3 = vpack.c.bf16 %v46_v2, %v46_v2  ;;  %478 = vmatprep.mubr.msk.bf16.mxu1 %vm545_vm1, %v544_v1  ;;  %482 = vmatprep.subr.bf16.mxu0 %v544_v1 }
   0x5   :  { %471 = vmatmul.mubr.msk.bf16.vlgmr.msra.gmra.mrb[0].mxu0 %vm63_vm0, %v47_v3 }
   0x6   :  { %484 = vmatprep.mubr.msk.bf16.mxu0 %vm545_vm1, %v544_v1 }
   0x7   :  { %18 = vsyncpa [#allocation3], 0  ;;  %v514_v4 = vld [vmem:[%s689_s3] sm:$0xff]   ;;  %v515_v5 = vld [vmem:[%s689_s3 + $0x8] sm:$0xff]   ;;  %vm132_vm2 = vcmask 261120   ;;  %v546_v43 = vmov 0  }
   0x8   :  { %475 = vmatpush3.bf16.msra.mxu1 %v514_v4  ;;  %v436_v6 = vld [vmem:[%s688_s2] ss:$0 sm:$0xff]  ;;  %v518_v24 = vld [vmem:[%s693_s7 + $0x8] sm:$0xff]   ;;  %512 = vset.pattern.permute.xlu0 %v546_v43  ;;  %vm373_vm3 = vcmask 523264   ;;  %vm420_vm4 = vcmask 64512  }
   0x9   :  { %476 = vmatprep.subr.bf16.mxu1 %v544_v1  ;;  %v516_v14 = vld [vmem:[%s691_s5] sm:$0xff]  }
   0xa   :  { %483 = vmatpush3.bf16.msra.mxu0 %v516_v14  ;;  %v439_v15 = vld [vmem:[%s690_s4] ss:$0 sm:$0xff] }
   0xb   :  { %496 = vmatprep.subr.bf16.mxu0 %v544_v1  ;;  %v517_v23 = vld [vmem:[%s693_s7] sm:$0xff]  }
   0xc   :  { %477 = vmatpush3.bf16.msra.mxu1 %v515_v5  ;;  %v443_v25 = vld [vmem:[%s692_s6] ss:$0 sm:$0xff] }
   0xd   :  { %488 = vmatprep.subr.bf16.mxu1 %v544_v1  ;;  %v519_v33 = vld [vmem:[%s695_s9] sm:$0xff]  }
   0xe   :  { %v446_v34 = vld [vmem:[%s694_s8] ss:$0 sm:$0xff] }
   0xf   :  { %v367_v42 = vld [vmem:[%s698_s12] sm:$0xff]  ;;  %s547_s12 = smov [#allocation2]  }
  0x10   :  { %370 = vperm.xlu0 %512, %v367_v42   ;;  %v450_v44 = vld [vmem:[%s696_s10] ss:$0 sm:$0xff]  ;;  %s428_s28 = sshll.u32 %s547_s12, 4  ;;  %s429_s28 = int_to_ptr.vmem [resolvable:$true] %s428_s28 }
  0x11   :  { %v366_v53 = vld [vmem:[%s697_s11] sm:$0xf]  ;;  %s520_s10 = scalar_lea.vmem %s429_s28, 128  ;;  %p525_p1 = scmp.lt.s32.totalorder %s429_s28, %s429_s28 }
  0x12   :  { %p521_p0 = scmp.ne.s32.totalorder %s429_s28, %s520_s10  ;;  %p526_p2 = scmp.lt.s32.totalorder %s520_s10, %s520_s10 }
  0x14   :  { %p527_p3 = por %p526_p2, %p525_p1 }
  0x16   :  { %p528_p4 = pnand %p527_p3, %p521_p0 }
  0x8f   :  { %v371_v54 = vpop.permute.xlu0 %370 }
  0xd8   :  { %v101_v7 = vpop.f32.mrb[0].mxu0 }
  0xd9   :  { %v102_v8 = vadd.f32 %v436_v6, %v101_v7  ;;  %v472_v9 = vpop.f32.mrb[1].mxu0 }
  0xda   :  { %v104_v10 = vpop.f32.mrb[2].mxu0 }
  0xdb   :  { %v107_v11 = vmax.f32 %v102_v8, 0.0  ;;  %v473_v12 = vpop.f32.mrb[3].mxu0 }
  0xdd   :  { %v108_v13 = vpack.c.bf16 %v107_v11, %v107_v11 }
  0xdf   :  { %479 = vmatmul.mubr.msk.bf16.vlgmr.msra.gmra.mrb[0].mxu1 %vm132_vm2, %v108_v13 }
  0xe0   :  { %492 = vmatprep.mubr.msk.bf16.mxu1 %vm545_vm1, %v544_v1  ;;  %489 = vmatpush3.bf16.msra.mxu1 %v517_v23 }
  0xe1   :  { %490 = vmatprep.subr.bf16.mxu1 %v544_v1 }
  0xe4   :  { %491 = vmatpush3.bf16.msra.mxu1 %v518_v24 }
  0xe5   :  { %502 = vmatprep.subr.bf16.mxu1 %v544_v1 }
 0x1b2   :  { %v170_v16 = vpop.f32.mrb[0].mxu1 }
 0x1b3   :  { %v171_v17 = vadd.f32 %v439_v15, %v170_v16  ;;  %v480_v18 = vpop.f32.mrb[1].mxu1 }
 0x1b4   :  { %v173_v19 = vpop.f32.mrb[2].mxu1 }
 0x1b5   :  { %v176_v20 = vmax.f32 %v171_v17, 0.0  ;;  %v481_v21 = vpop.f32.mrb[3].mxu1 }
 0x1b7   :  { %v177_v22 = vpack.c.bf16 %v176_v20, %v176_v20 }
 0x1b9   :  { %485 = vmatmul.mubr.msk.bf16.vlgmr.msra.gmra.mrb[4].mxu0 %vm63_vm0, %v177_v22 }
 0x1ba   :  { %498 = vmatprep.mubr.msk.bf16.mxu0 %vm545_vm1, %v544_v1  ;;  %497 = vmatpush3.bf16.msra.mxu0 %v519_v33 }
 0x28c   :  { %v230_v26 = vpop.f32.mrb[4].mxu0 }
 0x28d   :  { %v231_v27 = vadd.f32 %v443_v25, %v230_v26  ;;  %v486_v28 = vpop.f32.mrb[5].mxu0 }
 0x28e   :  { %v233_v29 = vpop.f32.mrb[6].mxu0 }
 0x28f   :  { %v236_v30 = vmax.f32 %v231_v27, 0.0  ;;  %v487_v31 = vpop.f32.mrb[7].mxu0 }
 0x291   :  { %v237_v32 = vpack.c.bf16 %v236_v30, %v236_v30 }
 0x293   :  { %493 = vmatmul.mubr.msk.bf16.vlgmr.msra.gmra.mrb[4].mxu1 %vm132_vm2, %v237_v32 }
 0x294   :  { %504 = vmatprep.mubr.msk.bf16.mxu1 %vm545_vm1, %v544_v1 }
 0x366   :  { %v298_v35 = vpop.f32.mrb[4].mxu1 }
 0x367   :  { %v299_v36 = vadd.f32 %v446_v34, %v298_v35  ;;  %v494_v37 = vpop.f32.mrb[5].mxu1 }
 0x368   :  { %v301_v38 = vpop.f32.mrb[6].mxu1 }
 0x369   :  { %v304_v39 = vmax.f32 %v299_v36, 0.0  ;;  %v495_v40 = vpop.f32.mrb[7].mxu1 }
 0x36b   :  { %v305_v41 = vpack.c.bf16 %v304_v39, %v304_v39 }
 0x36d   :  { %499 = vmatmul.mubr.msk.bf16.vlgmr.msra.gmra.mrb[8].mxu0 %vm63_vm0, %v305_v41 }
 0x440   :  { %v358_v45 = vpop.f32.mrb[8].mxu0 }
 0x441   :  { %v359_v46 = vadd.f32 %v450_v44, %v358_v45  ;;  %v500_v47 = vpop.f32.mrb[9].mxu0 }
 0x442   :  { %v361_v48 = vpop.f32.mrb[10].mxu0 }
 0x443   :  { %v364_v49 = vmax.f32 %v359_v46, 0.0  ;;  %v501_v50 = vpop.f32.mrb[11].mxu0 }
 0x445   :  { %v365_v51 = vpack.c.bf16 %v364_v49, %v364_v49 }
 0x447   :  { %v378_v52 = vsel %vm373_vm3, %v365_v51, 0 }
 0x448   :  { %503 = vmatpush3.bf16.xpose.msra.mxu1 %v378_v52 }
 0x44f   :  { %505 = vmatmul.mubr.msk.bf16.vlgmr.msra.gmra.mrb[8].mxu1 %vm373_vm3, %v366_v53 }
 0x522   :  { %v414_v55 = vpop.f32.mrb[8].mxu1 }
 0x523   :  { %v415_v56 = vadd.f32 %v414_v55, %v371_v54  ;;  %v506_v57 = vpop.f32.mrb[9].mxu1 }
 0x524   :  { %v417_v58 = vpop.f32.mrb[10].mxu1 }
 0x525   :  { %v507_v59 = vpop.f32.mrb[11].mxu1  ;;  %421 = vst.msk [vmem:[#allocation2] sm:$0xff] %vm420_vm4, %v415_v56 }
 0x526   :  { %531 = shalt.err (!%p528_p4)
}
 0x527   :  { %s532_s29 = scalar_lea.hbm %s699_s13, 128 }
 0x528   :  { %p533_p5 = scmp.ne.s32.totalorder %s699_s13, %s532_s29  ;;  %p536_p6 = scmp.lt.u32.totalorder %s532_s29, %s699_s13 }
 0x52a   :  { %p538_p7 = pnand %p536_p6, %p533_p5 }
 0x52c   :  { %541 = shalt.err (!%p538_p7)
}
 0x52d   :  { %431 = dma.vmem_to_hbm [thread:$0]  %s429_s28, 128, %s699_s13, [#allocation3]  }
 0x52e   :  { %542 = dma.done.wait [#allocation3], 128  }
 0x52f   :  { %543 = vsyncadd [#allocation3], 4294967168 }
 0x530   :  { %435 = vsyncpa [#allocation3], 1 }

</bundles_post_ra>
